<compile_context>
chip_gen: v7x
topology: tpu7x:2x2x1
jax: 0.10.0
libtpu: 0.0.40
codegen_flags: <defaults>
</compile_context>

<pallas_src>
import math
import functools

import jax
import jax.numpy as jnp
from jax.experimental import pallas as pl
from jax.experimental.pallas import tpu as pltpu


# --------------------------------------------------------------------------- #
# Stage 1: LayerNorm + r x r mean pooling + K/V projections (per (batch, H/r)) #
# --------------------------------------------------------------------------- #
def _kv_pool_kernel(x_ref, pc_ref, g_ref, b_ref,
                    wk_ref, bk_ref, wv_ref, bv_ref,
                    k_ref, v_ref, *, r, eps):
    x = x_ref[...]                                         # (r, W, D) f32

    # LayerNorm over last dim (biased variance, matches torch LayerNorm).
    mu = jnp.mean(x, axis=-1, keepdims=True)
    xc = x - mu
    var = jnp.mean(xc * xc, axis=-1, keepdims=True)
    ln = xc * jax.lax.rsqrt(var + eps) * g_ref[0] + b_ref[0]

    # Pool over the r rows along H (leading axis), unrolled (r is tiny).
    hp = ln[0]
    for p in range(1, r):
        hp = hp + ln[p]
    hp = hp * (1.0 / r)                                    # (W, D)

    # Pool over W with a tiny (W/r, W) averaging matmul (keeps D on lanes,
    # no dense (M, N) pooling matrix, no exotic reshapes). Kept in f32 (cheap).
    wp = jnp.dot(pc_ref[...], hp, preferred_element_type=jnp.float32)   # (W/r, D)

    # K / V projections: bf16 operands, f32 accumulation on the MXU.
    wpb = wp.astype(jnp.bfloat16)
    k = jnp.dot(wpb, wk_ref[...], preferred_element_type=jnp.float32) + bk_ref[0]
    v = jnp.dot(wpb, wv_ref[...], preferred_element_type=jnp.float32) + bv_ref[0]

    k_ref[0] = k.astype(k_ref.dtype)
    v_ref[0] = v.astype(v_ref.dtype)


# --------------------------------------------------------------------------- #
# Stage 2: per query tile: LayerNorm + Q + per-head attention + O projection   #
# --------------------------------------------------------------------------- #
def _attn_kernel(*refs, num_heads, head_dim, m, eps, with_attn, fuse_residual):
    if with_attn:
        (x_ref, k_ref, v_ref, g_ref, b_ref, wq_ref, bq_ref, wo_ref, bo_ref,
         out_ref, attn_ref, o_acc) = refs
    else:
        (x_ref, k_ref, v_ref, g_ref, b_ref, wq_ref, bq_ref, wo_ref, bo_ref,
         out_ref, o_acc) = refs
        attn_ref = None

    x = x_ref[...]                                         # (tq, D) f32

    # LayerNorm over last dim.
    mu = jnp.mean(x, axis=-1, keepdims=True)
    xc = x - mu
    var = jnp.mean(xc * xc, axis=-1, keepdims=True)
    ln = xc * jax.lax.rsqrt(var + eps) * g_ref[0] + b_ref[0]

    # Q projection (attn_scale already folded into wq / bq in the wrapper).
    q = jnp.dot(ln.astype(jnp.bfloat16), wq_ref[...],
                preferred_element_type=jnp.float32) + bq_ref[0]
    qb = q.astype(jnp.bfloat16)

    for hh in range(num_heads):
        lo = hh * head_dim
        hi = lo + head_dim
        kh = k_ref[:, lo:hi]                               # (M, hd) bf16, ref slice
        vh = v_ref[:, lo:hi]                               # (M, hd) bf16, ref slice

        s = jax.lax.dot_general(qb[:, lo:hi], kh, (((1,), (1,)), ((), ())),
                                preferred_element_type=jnp.float32)      # (tq, M)
        s = s - jnp.max(s, axis=-1, keepdims=True)
        e = jnp.exp(s)
        p = e * pl.reciprocal(jnp.sum(e, axis=-1, keepdims=True), approx=True)

        if with_attn:
            attn_ref[:, hh * m:(hh + 1) * m] = p           # lane-dense (tq, nh*M) block

        o_acc[:, lo:hi] = jnp.dot(p.astype(jnp.bfloat16), vh,
                                  preferred_element_type=jnp.float32)    # (tq, hd)

    o = jnp.dot(o_acc[...].astype(jnp.bfloat16), wo_ref[...],
                preferred_element_type=jnp.float32) + bo_ref[0]
    if fuse_residual:
        o = o + x                                          # residual (shift_size == 0)
    out_ref[...] = o


def _pick_tq(n, want):
    """Largest multiple of 8 that divides n and is <= want; fall back to n."""
    want = max(8, min(want, n))
    for t in range(want - want % 8, 7, -8):
        if n % t == 0:
            return t
    return n


def pre_norm_reduction_sa(x, params, *, num_heads, reduction_ratio, shift_size=0,
                          tq=128, return_attn=True):
    """x: (B, H, W, D) float32.

    Returns (out (B,H,W,D), attn (B,nh,H*W,M)) if return_attn else out only.
    """
    b, h, w, d = x.shape
    r = reduction_ratio
    assert d % num_heads == 0 and h % r == 0 and w % r == 0
    head_dim = d // num_heads
    n = h * w
    hr, wr = h // r, w // r
    m = hr * wr
    attn_scale = math.sqrt(1.0 / head_dim)
    eps = 1e-5

    identity = x
    if shift_size > 0:
        x = jnp.roll(x, shift=(-shift_size, -shift_size), axis=(1, 2))

    gamma, beta = params["gamma"], params["beta"]                      # (1, D) f32
    # Weights cast to bf16 once (halves weight VMEM, MXU-native); biases stay f32.
    # attn_scale folded into the Q projection so the kernel never rescales scores.
    wq = (params["wq"] * attn_scale).astype(jnp.bfloat16)
    bq = params["bq"] * attn_scale
    wk = params["wk"].astype(jnp.bfloat16)
    bk = params["bk"]
    wv = params["wv"].astype(jnp.bfloat16)
    bv = params["bv"]
    wo = params["wo"].astype(jnp.bfloat16)
    bo = params["bo"]

    # Tiny column-pooling matrix: (W/r, W), pc[c, j] = 1/r if j // r == c.
    cols = jnp.arange(w) // r
    pc = (jnp.arange(wr)[:, None] == cols[None, :]).astype(jnp.float32) / r

    cparams = pltpu.CompilerParams(
        dimension_semantics=("parallel", "parallel"),
        vmem_limit_bytes=48 * 1024 * 1024)

    # ------------------------- Stage 1: pooled K / V ------------------------- #
    kv_kernel = functools.partial(_kv_pool_kernel, r=r, eps=eps)
    const2d = lambda shape: pl.BlockSpec(shape, lambda bi, ai: (0, 0))
    k4, v4 = pl.pallas_call(
        kv_kernel,
        out_shape=(jax.ShapeDtypeStruct((b, hr, wr, d), jnp.bfloat16),
                   jax.ShapeDtypeStruct((b, hr, wr, d), jnp.bfloat16)),
        grid=(b, hr),
        in_specs=[
            pl.BlockSpec((None, r, w, d), lambda bi, ai: (bi, ai, 0, 0)),   # x rows
            const2d((wr, w)),                                               # pc
            const2d((1, d)), const2d((1, d)),                               # gamma, beta
            const2d((d, d)), const2d((1, d)),                               # wk, bk
            const2d((d, d)), const2d((1, d)),                               # wv, bv
        ],
        out_specs=(
            pl.BlockSpec((None, 1, wr, d), lambda bi, ai: (bi, ai, 0, 0)),
            pl.BlockSpec((None, 1, wr, d), lambda bi, ai: (bi, ai, 0, 0)),
        ),
        compiler_params=cparams,
    )(x, pc, gamma, beta, wk, bk, wv, bv)

    k_flat = k4.reshape(b, m, d)
    v_flat = v4.reshape(b, m, d)
    x_flat = x.reshape(b, n, d)

    # ------------------------- Stage 2: attention ---------------------------- #
    tq = _pick_tq(n, tq)
    fuse_residual = (shift_size == 0)
    attn_kernel = functools.partial(
        _attn_kernel, num_heads=num_heads, head_dim=head_dim, m=m, eps=eps,
        with_attn=return_attn, fuse_residual=fuse_residual)

    out_struct = jax.ShapeDtypeStruct((b, n, d), jnp.float32)
    out_spec = pl.BlockSpec((None, tq, d), lambda bi, ti: (bi, ti, 0))
    if return_attn:
        out_shape = (out_struct,
                     jax.ShapeDtypeStruct((b, n, num_heads * m), jnp.float32))
        out_specs = (out_spec,
                     pl.BlockSpec((None, tq, num_heads * m), lambda bi, ti: (bi, ti, 0)))
    else:
        out_shape = out_struct
        out_specs = out_spec

    const2d_2 = lambda shape: pl.BlockSpec(shape, lambda bi, ti: (0, 0))
    res = pl.pallas_call(
        attn_kernel,
        out_shape=out_shape,
        grid=(b, n // tq),
        in_specs=[
            pl.BlockSpec((None, tq, d), lambda bi, ti: (bi, ti, 0)),  # x tile
            pl.BlockSpec((None, m, d), lambda bi, ti: (bi, 0, 0)),    # k (bf16)
            pl.BlockSpec((None, m, d), lambda bi, ti: (bi, 0, 0)),    # v (bf16)
            const2d_2((1, d)), const2d_2((1, d)),                     # gamma, beta
            const2d_2((d, d)), const2d_2((1, d)),                     # wq, bq (pre-scaled)
            const2d_2((d, d)), const2d_2((1, d)),                     # wo, bo
        ],
        out_specs=out_specs,
        scratch_shapes=[pltpu.VMEM((tq, d), jnp.float32)],            # per-head O accum
        compiler_params=cparams,
    )(x_flat, k_flat, v_flat, gamma, beta, wq, bq, wo, bo)

    if return_attn:
        sa_out, attn_flat = res
    else:
        sa_out, attn_flat = res, None

    sa_out = sa_out.reshape(b, h, w, d)
    if fuse_residual:
        out = sa_out                                        # residual added in-kernel
    else:
        sa_out = jnp.roll(sa_out, shift=(shift_size, shift_size), axis=(1, 2))
        out = sa_out + identity

    if return_attn:
        # lane-dense (B, N, nh*M) -> module layout (B, nh, N, M)
        attn = attn_flat.reshape(b, n, num_heads, m).transpose(0, 2, 1, 3)
        return out, attn
    return out


# --------------------------------------------------------------------------- #
# Pure-JAX reference (f32) mirroring the PyTorch forward                       #
# --------------------------------------------------------------------------- #
def _reference(x, params, *, num_heads, reduction_ratio, shift_size=0):
    b, h, w, d = x.shape
    r = reduction_ratio
    head_dim = d // num_heads
    identity = x
    if shift_size > 0:
        x = jnp.roll(x, shift=(-shift_size, -shift_size), axis=(1, 2))
    mu = jnp.mean(x, -1, keepdims=True)
    var = jnp.mean((x - mu) ** 2, -1, keepdims=True)
    xn = (x - mu) / jnp.sqrt(var + 1e-5) * params["gamma"][0] + params["beta"][0]
    q = xn @ params["wq"] + params["bq"][0]
    x_half = xn.reshape(b, h // r, r, w // r, r, d).mean(axis=(2, 4))
    k = x_half @ params["wk"] + params["bk"][0]
    v = x_half @ params["wv"] + params["bv"][0]

    def to4d(t):
        bb, hh, ww, dd = t.shape
        return jnp.transpose(t.reshape(bb, hh * ww, num_heads, dd // num_heads),
                             (0, 2, 1, 3))
    qf, kf, vf = to4d(q), to4d(k), to4d(v)
    attn = jnp.einsum("bhnd,bhmd->bhnm", qf, kf) * math.sqrt(1.0 / head_dim)
    attn = jax.nn.softmax(attn, axis=-1)
    out = jnp.einsum("bhnm,bhmd->bhnd", attn, vf)
    out = jnp.transpose(out, (0, 2, 1, 3)).reshape(b, h, w, d)
    out = out @ params["wo"] + params["bo"][0]
    if shift_size > 0:
        out = jnp.roll(out, shift=(shift_size, shift_size), axis=(1, 2))
    return out + identity, attn


def _init_params(key, d):
    ks = jax.random.split(key, 9)
    scale = 1.0 / math.sqrt(d)
    p = {
        "gamma": jnp.ones((1, d), jnp.float32),
        "beta": jnp.zeros((1, d), jnp.float32),
    }
    for name, kk in zip(["q", "k", "v", "o"], ks[:4]):
        # stored already transposed: y = x @ w + b  (w is (in, out))
        p["w" + name] = jax.random.uniform(kk, (d, d), jnp.float32, -scale, scale)
    for name, kk in zip(["q", "k", "v", "o"], ks[4:8]):
        p["b" + name] = jax.random.uniform(kk, (1, d), jnp.float32, -scale, scale)
    return p


if __name__ == "__main__":
    B, H, W, D = 2, 8, 8, 32
    NUM_HEADS = 4
    REDUCTION_RATIO = 2
    SHIFT_SIZE = 0   # module default; shift>0 handled by jnp.roll in the wrapper

    key = jax.random.PRNGKey(0)
    kx, kp = jax.random.split(key)
    x = jax.random.normal(kx, (B, H, W, D), jnp.float32)
    params = _init_params(kp, D)

    out, attn = pre_norm_reduction_sa(
        x, params, num_heads=NUM_HEADS, reduction_ratio=REDUCTION_RATIO,
        shift_size=SHIFT_SIZE, tq=32, return_attn=True)
    out = jax.block_until_ready(out)
    attn = jax.block_until_ready(attn)

    # attn-free fast path (skips the (B, nh, N, M) HBM write entirely)
    out_only = pre_norm_reduction_sa(
        x, params, num_heads=NUM_HEADS, reduction_ratio=REDUCTION_RATIO,
        shift_size=SHIFT_SIZE, tq=32, return_attn=False)
    out_only = jax.block_until_ready(out_only)

    ref_out, ref_attn = _reference(
        x, params, num_heads=NUM_HEADS, reduction_ratio=REDUCTION_RATIO,
        shift_size=SHIFT_SIZE)

    M = (H // REDUCTION_RATIO) * (W // REDUCTION_RATIO)
    assert out.shape == (B, H, W, D)
    assert attn.shape == (B, NUM_HEADS, H * W, M)
    # bf16 matmul operands + approx reciprocal -> slightly looser tolerances
    assert jnp.allclose(out, ref_out, atol=5e-2, rtol=5e-2)
    assert jnp.allclose(attn, ref_attn, atol=2e-2, rtol=2e-2)
    assert jnp.allclose(out_only, out, atol=1e-5, rtol=1e-5)
    print("KERNEL_OK")
</pallas_src>

<mosaic_0001>
module attributes {stable_mosaic.version = 11 : i64} {
  func.func @_kv_pool_kernel(%arg0: i32, %arg1: i32, %arg2: memref<1x2x8x32xf32, #tpu.memory_space<vmem>>, %arg3: memref<4x8xf32, #tpu.memory_space<vmem>>, %arg4: memref<1x32xf32, #tpu.memory_space<vmem>>, %arg5: memref<1x32xf32, #tpu.memory_space<vmem>>, %arg6: memref<32x32xbf16, #tpu.memory_space<vmem>>, %arg7: memref<1x32xf32, #tpu.memory_space<vmem>>, %arg8: memref<32x32xbf16, #tpu.memory_space<vmem>>, %arg9: memref<1x32xf32, #tpu.memory_space<vmem>>, %arg10: memref<1x1x4x32xbf16, #tpu.memory_space<vmem>>, %arg11: memref<1x1x4x32xbf16, #tpu.memory_space<vmem>>) attributes {dimension_semantics = [#tpu.dimension_semantics<parallel>, #tpu.dimension_semantics<parallel>], iteration_bounds = array<i64: 2, 4>, scalar_prefetch = 0 : i64, scratch_operands = 0 : i64, tpu.core_type = #tpu.core_type<tc>, window_params = [{transform_indices = @transform_0, window_bounds = array<i64: 1, 2, 8, 32>}, {pipeline_mode = #tpu.pipeline_mode<synchronous>, transform_indices = @transform_1, window_bounds = array<i64: 4, 8>}, {pipeline_mode = #tpu.pipeline_mode<synchronous>, transform_indices = @transform_2, window_bounds = array<i64: 1, 32>}, {pipeline_mode = #tpu.pipeline_mode<synchronous>, transform_indices = @transform_3, window_bounds = array<i64: 1, 32>}, {pipeline_mode = #tpu.pipeline_mode<synchronous>, transform_indices = @transform_4, window_bounds = array<i64: 32, 32>}, {pipeline_mode = #tpu.pipeline_mode<synchronous>, transform_indices = @transform_5, window_bounds = array<i64: 1, 32>}, {pipeline_mode = #tpu.pipeline_mode<synchronous>, transform_indices = @transform_6, window_bounds = array<i64: 32, 32>}, {pipeline_mode = #tpu.pipeline_mode<synchronous>, transform_indices = @transform_7, window_bounds = array<i64: 1, 32>}, {transform_indices = @transform_8, window_bounds = array<i64: 1, 1, 4, 32>}, {transform_indices = @transform_9, window_bounds = array<i64: 1, 1, 4, 32>}]} {
    %c0 = arith.constant 0 : index
    %c0_0 = arith.constant 0 : index
    %c0_1 = arith.constant 0 : index
    %c0_2 = arith.constant 0 : index
    %0 = vector.load %arg2[%c0, %c0_0, %c0_1, %c0_2] : memref<1x2x8x32xf32, #tpu.memory_space<vmem>>, vector<1x2x8x32xf32>
    %1 = vector.shape_cast %0 : vector<1x2x8x32xf32> to vector<2x8x32xf32>
    %cst = arith.constant dense<0.000000e+00> : vector<2x8xf32>
    %2 = vector.multi_reduction <add>, %1, %cst [2] : vector<2x8x32xf32> to vector<2x8xf32>
    %3 = vector.shape_cast %2 : vector<2x8xf32> to vector<2x8x1xf32>
    %cst_3 = arith.constant 3.200000e+01 : f32
    %4 = vector.broadcast %cst_3 : f32 to vector<2x8x1xf32>
    %5 = arith.divf %3, %4 : vector<2x8x1xf32>
    %6 = vector.broadcast %5 : vector<2x8x1xf32> to vector<2x8x32xf32>
    %7 = arith.subf %1, %6 : vector<2x8x32xf32>
    %8 = arith.mulf %7, %7 : vector<2x8x32xf32>
    %cst_4 = arith.constant dense<0.000000e+00> : vector<2x8xf32>
    %9 = vector.multi_reduction <add>, %8, %cst_4 [2] : vector<2x8x32xf32> to vector<2x8xf32>
    %10 = vector.shape_cast %9 : vector<2x8xf32> to vector<2x8x1xf32>
    %cst_5 = arith.constant 3.200000e+01 : f32
    %11 = vector.broadcast %cst_5 : f32 to vector<2x8x1xf32>
    %12 = arith.divf %10, %11 : vector<2x8x1xf32>
    %cst_6 = arith.constant 9.99999974E-6 : f32
    %13 = vector.broadcast %cst_6 : f32 to vector<2x8x1xf32>
    %14 = arith.addf %12, %13 : vector<2x8x1xf32>
    %15 = math.rsqrt %14 : vector<2x8x1xf32>
    %16 = vector.broadcast %15 : vector<2x8x1xf32> to vector<2x8x32xf32>
    %17 = arith.mulf %7, %16 : vector<2x8x32xf32>
    %c0_7 = arith.constant 0 : index
    %c0_8 = arith.constant 0 : index
    %18 = vector.load %arg4[%c0_7, %c0_8] : memref<1x32xf32, #tpu.memory_space<vmem>>, vector<1x32xf32>
    %19 = vector.shape_cast %18 : vector<1x32xf32> to vector<32xf32>
    %20 = vector.shape_cast %19 : vector<32xf32> to vector<1x1x32xf32>
    %21 = vector.broadcast %20 : vector<1x1x32xf32> to vector<2x8x32xf32>
    %22 = arith.mulf %17, %21 : vector<2x8x32xf32>
    %c0_9 = arith.constant 0 : index
    %c0_10 = arith.constant 0 : index
    %23 = vector.load %arg5[%c0_9, %c0_10] : memref<1x32xf32, #tpu.memory_space<vmem>>, vector<1x32xf32>
    %24 = vector.shape_cast %23 : vector<1x32xf32> to vector<32xf32>
    %25 = vector.shape_cast %24 : vector<32xf32> to vector<1x1x32xf32>
    %26 = vector.broadcast %25 : vector<1x1x32xf32> to vector<2x8x32xf32>
    %27 = arith.addf %22, %26 : vector<2x8x32xf32>
    %28 = vector.extract_strided_slice %27 {offsets = [0, 0, 0], sizes = [1, 8, 32], strides = [1, 1, 1]} : vector<2x8x32xf32> to vector<1x8x32xf32>
    %29 = vector.shape_cast %28 : vector<1x8x32xf32> to vector<8x32xf32>
    %30 = vector.extract_strided_slice %27 {offsets = [1, 0, 0], sizes = [1, 8, 32], strides = [1, 1, 1]} : vector<2x8x32xf32> to vector<1x8x32xf32>
    %31 = vector.shape_cast %30 : vector<1x8x32xf32> to vector<8x32xf32>
    %32 = arith.addf %29, %31 : vector<8x32xf32>
    %cst_11 = arith.constant 5.000000e-01 : f32
    %33 = vector.broadcast %cst_11 : f32 to vector<8x32xf32>
    %34 = arith.mulf %32, %33 : vector<8x32xf32>
    %c0_12 = arith.constant 0 : index
    %c0_13 = arith.constant 0 : index
    %35 = vector.load %arg3[%c0_12, %c0_13] : memref<4x8xf32, #tpu.memory_space<vmem>>, vector<4x8xf32>
    %cst_14 = arith.constant dense<0.000000e+00> : vector<4x32xf32>
    %36 = tpu.matmul %35, %34, %cst_14 {dimension_numbers = #tpu.dot_dimension_numbers<[1], [0], [0], [1], [0, 0, 1, 1], [], []>} : vector<4x8xf32>, vector<8x32xf32>, vector<4x32xf32> -> vector<4x32xf32>
    %37 = arith.truncf %36 : vector<4x32xf32> to vector<4x32xbf16>
    %c0_15 = arith.constant 0 : index
    %c0_16 = arith.constant 0 : index
    %38 = vector.load %arg6[%c0_15, %c0_16] : memref<32x32xbf16, #tpu.memory_space<vmem>>, vector<32x32xbf16>
    %cst_17 = arith.constant dense<0.000000e+00> : vector<4x32xf32>
    %39 = tpu.matmul %37, %38, %cst_17 {dimension_numbers = #tpu.dot_dimension_numbers<[1], [0], [0], [1], [0, 0, 1, 1], [], []>} : vector<4x32xbf16>, vector<32x32xbf16>, vector<4x32xf32> -> vector<4x32xf32>
    %c0_18 = arith.constant 0 : index
    %c0_19 = arith.constant 0 : index
    %40 = vector.load %arg7[%c0_18, %c0_19] : memref<1x32xf32, #tpu.memory_space<vmem>>, vector<1x32xf32>
    %41 = vector.shape_cast %40 : vector<1x32xf32> to vector<32xf32>
    %42 = vector.shape_cast %41 : vector<32xf32> to vector<1x32xf32>
    %43 = vector.broadcast %42 : vector<1x32xf32> to vector<4x32xf32>
    %44 = arith.addf %39, %43 : vector<4x32xf32>
    %c0_20 = arith.constant 0 : index
    %c0_21 = arith.constant 0 : index
    %45 = vector.load %arg8[%c0_20, %c0_21] : memref<32x32xbf16, #tpu.memory_space<vmem>>, vector<32x32xbf16>
    %cst_22 = arith.constant dense<0.000000e+00> : vector<4x32xf32>
    %46 = tpu.matmul %37, %45, %cst_22 {dimension_numbers = #tpu.dot_dimension_numbers<[1], [0], [0], [1], [0, 0, 1, 1], [], []>} : vector<4x32xbf16>, vector<32x32xbf16>, vector<4x32xf32> -> vector<4x32xf32>
    %c0_23 = arith.constant 0 : index
    %c0_24 = arith.constant 0 : index
    %47 = vector.load %arg9[%c0_23, %c0_24] : memref<1x32xf32, #tpu.memory_space<vmem>>, vector<1x32xf32>
    %48 = vector.shape_cast %47 : vector<1x32xf32> to vector<32xf32>
    %49 = vector.shape_cast %48 : vector<32xf32> to vector<1x32xf32>
    %50 = vector.broadcast %49 : vector<1x32xf32> to vector<4x32xf32>
    %51 = arith.addf %46, %50 : vector<4x32xf32>
    %52 = arith.truncf %44 : vector<4x32xf32> to vector<4x32xbf16>
    %c0_25 = arith.constant 0 : index
    %c0_26 = arith.constant 0 : index
    %c0_27 = arith.constant 0 : index
    %c0_28 = arith.constant 0 : index
    %53 = vector.load %arg10[%c0_25, %c0_26, %c0_27, %c0_28] : memref<1x1x4x32xbf16, #tpu.memory_space<vmem>>, vector<1x1x4x32xbf16>
    %54 = vector.shape_cast %53 : vector<1x1x4x32xbf16> to vector<4x32xbf16>
    %55 = vector.shape_cast %52 : vector<4x32xbf16> to vector<1x1x4x32xbf16>
    tpu.vector_store %arg10[%c0_25, %c0_26, %c0_27, %c0_28], %55 {strides = array<i32>} : memref<1x1x4x32xbf16, #tpu.memory_space<vmem>>, vector<1x1x4x32xbf16>,
    %56 = arith.truncf %51 : vector<4x32xf32> to vector<4x32xbf16>
    %c0_29 = arith.constant 0 : index
    %c0_30 = arith.constant 0 : index
    %c0_31 = arith.constant 0 : index
    %c0_32 = arith.constant 0 : index
    %57 = vector.load %arg11[%c0_29, %c0_30, %c0_31, %c0_32] : memref<1x1x4x32xbf16, #tpu.memory_space<vmem>>, vector<1x1x4x32xbf16>
    %58 = vector.shape_cast %57 : vector<1x1x4x32xbf16> to vector<4x32xbf16>
    %59 = vector.shape_cast %56 : vector<4x32xbf16> to vector<1x1x4x32xbf16>
    tpu.vector_store %arg11[%c0_29, %c0_30, %c0_31, %c0_32], %59 {strides = array<i32>} : memref<1x1x4x32xbf16, #tpu.memory_space<vmem>>, vector<1x1x4x32xbf16>,
    return
  }
  func.func @transform_0(%arg0: i32, %arg1: i32) -> (i32, i32, i32, i32) {
    %c0_i32 = arith.constant 0 : i32
    %c0_i32_0 = arith.constant 0 : i32
    %c0_i32_1 = arith.constant 0 : i32
    return %arg0, %arg1, %c0_i32, %c0_i32_0 : i32, i32, i32, i32
  }
  func.func @transform_1(%arg0: i32, %arg1: i32) -> (i32, i32) {
    %c0_i32 = arith.constant 0 : i32
    %c0_i32_0 = arith.constant 0 : i32
    %c0_i32_1 = arith.constant 0 : i32
    return %c0_i32, %c0_i32_0 : i32, i32
  }
  func.func @transform_2(%arg0: i32, %arg1: i32) -> (i32, i32) {
    %c0_i32 = arith.constant 0 : i32
    %c0_i32_0 = arith.constant 0 : i32
    %c0_i32_1 = arith.constant 0 : i32
    return %c0_i32, %c0_i32_0 : i32, i32
  }
  func.func @transform_3(%arg0: i32, %arg1: i32) -> (i32, i32) {
    %c0_i32 = arith.constant 0 : i32
    %c0_i32_0 = arith.constant 0 : i32
    %c0_i32_1 = arith.constant 0 : i32
    return %c0_i32, %c0_i32_0 : i32, i32
  }
  func.func @transform_4(%arg0: i32, %arg1: i32) -> (i32, i32) {
    %c0_i32 = arith.constant 0 : i32
    %c0_i32_0 = arith.constant 0 : i32
    %c0_i32_1 = arith.constant 0 : i32
    return %c0_i32, %c0_i32_0 : i32, i32
  }
  func.func @transform_5(%arg0: i32, %arg1: i32) -> (i32, i32) {
    %c0_i32 = arith.constant 0 : i32
    %c0_i32_0 = arith.constant 0 : i32
    %c0_i32_1 = arith.constant 0 : i32
    return %c0_i32, %c0_i32_0 : i32, i32
  }
  func.func @transform_6(%arg0: i32, %arg1: i32) -> (i32, i32) {
    %c0_i32 = arith.constant 0 : i32
    %c0_i32_0 = arith.constant 0 : i32
    %c0_i32_1 = arith.constant 0 : i32
    return %c0_i32, %c0_i32_0 : i32, i32
  }
  func.func @transform_7(%arg0: i32, %arg1: i32) -> (i32, i32) {
    %c0_i32 = arith.constant 0 : i32
    %c0_i32_0 = arith.constant 0 : i32
    %c0_i32_1 = arith.constant 0 : i32
    return %c0_i32, %c0_i32_0 : i32, i32
  }
  func.func @transform_8(%arg0: i32, %arg1: i32) -> (i32, i32, i32, i32) {
    %c0_i32 = arith.constant 0 : i32
    %c0_i32_0 = arith.constant 0 : i32
    %c0_i32_1 = arith.constant 0 : i32
    return %arg0, %arg1, %c0_i32, %c0_i32_0 : i32, i32, i32, i32
  }
  func.func @transform_9(%arg0: i32, %arg1: i32) -> (i32, i32, i32, i32) {
    %c0_i32 = arith.constant 0 : i32
    %c0_i32_0 = arith.constant 0 : i32
    %c0_i32_1 = arith.constant 0 : i32
    return %arg0, %arg1, %c0_i32, %c0_i32_0 : i32, i32, i32, i32
  }
}

</mosaic_0001>

<bundles_post_ra>
// kernel: tpu_custom_call.1
= control target key start
LH: loop header
LB: loop body
LE: loop exit
PB: predicated region body
PF: predicated region fallthrough
CT: control target
= control target key end

     0   :  { %s1636_s0 = inlined_call_operand.hbm [shape: f32[2,8,8,32], index: 0, kind: input, shape index: {}]   ;;  %s1637_s1 = inlined_call_operand.hbm [shape: f32[4,8], index: 1, kind: input, shape index: {}]   ;;  %s1638_s2 = inlined_call_operand.vmem [shape: f32[1,32], index: 2, kind: input, shape index: {}]   ;;  %s1639_s3 = inlined_call_operand.vmem [shape: f32[1,32], index: 3, kind: input, shape index: {}]   ;;  %s1640_s4 = inlined_call_operand.hbm [shape: bf16[32,32], index: 4, kind: input, shape index: {}]   ;;  %s1641_s5 = inlined_call_operand.vmem [shape: f32[1,32], index: 5, kind: input, shape index: {}]   ;;  %s1642_s6 = inlined_call_operand.vmem [shape: bf16[32,32], index: 6, kind: input, shape index: {}]   ;;  %s1643_s7 = inlined_call_operand.vmem [shape: f32[1,32], index: 7, kind: input, shape index: {}]   ;;  %s1644_s8 = inlined_call_operand.hbm [shape: bf16[2,4,4,32], index: 8, kind: output, shape index: {0}]   ;;  %s1645_s9 = inlined_call_operand.hbm [shape: bf16[2,4,4,32], index: 9, kind: output, shape index: {1}]  }
   0x1   :  { %1662 = sst [smem:[#allocation21_spill]] %s1637_s1 }
   0x2   :  { %1663 = sst [smem:[#allocation22_spill]] %s1640_s4 }
   0x3   :  { %1664 = sst [smem:[#allocation23_spill]] %s1644_s8 }
   0x4   :  { %1665 = sst [smem:[#allocation24_spill]] %s1645_s9 }
   0x5   :  { %15 = vsyncpa [#allocation3], 0 }
   0x6   :  { %17 = vsyncpa [#allocation3 + $0x1], 0 }
   0x7   :  { %18 = vsyncpa [#allocation6], 0 }
   0x8   :  { %19 = vsyncpa [#allocation4], 0 }
   0x9   :  { %21 = vsyncpa [#allocation4 + $0x1], 0 }
   0xa   :  { %22 = vsyncpa [#allocation10], 0 }
   0xb   :  { %24 = vsyncpa [#allocation10 + $0x1], 0  ;;  %s1311_s30 = smov 0   ;;  %s1313_s10 = smov 0  }
   0xc   :  { %s1315_s11 = smov 0   ;;  %s1317_s12 = smov 0  }
   0xd   :  { %s1319_s13 = smov 0   ;;  %s1321_s14 = smov 0  }
   0xe   :  { %s1323_s15 = smov 0   ;;  %s1325_s16 = smov 0  }
   0xf LB: > { %1666 = sst [smem:[#allocation15_spill]] %s1220_s30  ;;  %s846_s17 = sadd.s32 4294967295, %s1248_s16   ;;  %s1248_s16 = sphi %s1325_s16, %s30_s16   ;;  %s1244_s15 = sphi %s1323_s15, %s1701_s15   ;;  %s1240_s14 = sphi %s1321_s14, %s1696_s14   ;;  %s1236_s13 = sphi %s1319_s13, %s1700_s13   ;;  %s1232_s12 = sphi %s1317_s12, %s1695_s12   ;;  %s1228_s11 = sphi %s1315_s11, %s1699_s11   ;;  %s1224_s10 = sphi %s1313_s10, %s1698_s10   ;;  %s1220_s30 = sphi %s1311_s30, %s1697_s30  }
  0x10   : > { %1667 = sst [smem:[#allocation16_spill]] %s1240_s14  ;;  %s847_s18 = sadd.s32 4294967294, %s1248_s16  }
  0x11   : > { %1668 = sst [smem:[#allocation17_spill]] %s1248_s16  ;;  %p58_p0 = scmp.ne.s32.totalorder %s1228_s11, %s1224_s10 }
  0x12   : > { %p59_p1 = scmp.eq.s32.totalorder %s1248_s16, 0  ;;  %p64_p2 = scmp.ne.s32.totalorder %s1224_s10, %s1220_s30 }
  0x13   : > { %p1359_p3 = scmp.eq.s32.totalorder %s846_s17, 0  ;;  %p237_p4 = scmp.eq.s32.totalorder %s846_s17, 7 }
  0x14   : > { %p1363_p5 = por %p59_p1, %p58_p0  ;;  %p243_p6 = scmp.eq.s32.totalorder %s847_s18, 7 }
  0x15   : > { %s1669_s20 = scalar_select %p1359_p3, 1, 0 }
  0x16   : > { %p1369_p7 = por %p1359_p3, %p64_p2  ;;  %p1373_p8 = por %p237_p4, %p58_p0 }
  0x17   : > { %p1377_p9 = por %p243_p6, %p64_p2  ;;  %p848_p10 = scmp.ge.s32.totalorder %s1248_s16, 1 }
  0x18   : > { %s1671_s22 = scalar_select %p1369_p7, 1, 0 }
  0x19   : > { %s1672_s23 = scalar_select %p1373_p8, 1, 0 }
  0x1a   : > { %s1674_s24 = scalar_select %p1377_p9, 1, 0 }
  0x1b   : > { %1673 = sst [smem:[#allocation18_spill]] %s1672_s23  ;;  %p278_p11 = scmp.lt.s32.totalorder %s1248_s16, 9 }
  0x1c   : > { %1675 = sst [smem:[#allocation19_spill]] %s1674_s24  ;;  %s1250_s26 = smov [#allocation5]  }
  0x1d   : > { %p1383_p12 = pnand %p848_p10, %p278_p11  ;;  %s291_s27 = sshll.u32 %s1250_s26, 4  ;;  %s292_s27 = int_to_ptr.vmem [resolvable:$true] %s291_s27 }
  0x1e   : > { %p944_p13 = scmp.lt.s32.totalorder %s1248_s16, 8  ;;  %s1251_s29 = smov [#allocation7]  }
  0x1f   : > { %s1676_s25 = scalar_select %p1383_p12, 1, 0 }
  0x20   : > { %p924_p0 = pneg %p1383_p12  ;;  %p1392_p1 = pnand %p944_p13, %p1363_p5 }
  0x21   : > { %s307_s17 = sshll.u32 %s1251_s29, 4  ;;  %s1679_s1 = sld [smem:[#allocation21_spill]]  ;;  %s1402_s17 = int_to_ptr.vmem [resolvable:$true] %s307_s17 }
  0x22   : > { %s1677_s28 = scalar_select %p1392_p1, 1, 0 }
  0x23   : > { %p1398_p2 = pnand %p924_p0, %p1359_p3 }
  0x25   : > { %p1030_p5 = pneg %p1398_p2 }
  0x27   : > { %s1028_s24 = scalar_lea.hbm %s1679_s1, 64 }
  0x28   : > { %p1029_p4 = scmp.ne.s32.totalorder %s1679_s1, %s1028_s24  ;;  %p1035_p11 = scmp.lt.u32.totalorder %s1028_s24, %s1679_s1 }
  0x2a   : > { %p1031_p6 = pnand %p1030_p5, %p1029_p4 }
  0x2c   : > { %p1032_p10 = pneg %p1031_p6 }
  0x2e   : > { %p1037_p13 = pnand %p1035_p11, %p1032_p10 }
  0x30   : > { %1040 = shalt.err (!%p1037_p13)
}
  0x31   : > { %s1041_s9 = scalar_lea.vmem %s292_s27, 64  ;;  %p1049_p3 = scmp.lt.s32.totalorder %s292_s27, %s292_s27 }
  0x32   : > { %p1042_p0 = scmp.ne.s32.totalorder %s292_s27, %s1041_s9  ;;  %p1050_p7 = scmp.lt.s32.totalorder %s1041_s9, %s1041_s9 }
  0x34   : > { %p1044_p9 = pnand %p1042_p0, %p1030_p5  ;;  %p1051_p12 = por %p1050_p7, %p1049_p3 }
  0x36   : > { %p1045_p8 = pneg %p1044_p9 }
  0x38   : > { %p1052_p1 = pnand %p1051_p12, %p1045_p8 }
  0x3a   : > { %1055 = shalt.err (!%p1052_p1)
}
  0x3b   : > { %927 = dma.hbm_to_vmem [thread:$0]  (!%p1398_p2), %s1679_s1, 64, %s292_s27, [#allocation6]  }
  0x3c   : > { %s1680_s4 = sld [smem:[#allocation22_spill]] }
  0x42   : > { %s1056_s26 = scalar_lea.hbm %s1680_s4, 256 }
  0x43   : > { %p1057_p9 = scmp.ne.s32.totalorder %s1680_s4, %s1056_s26  ;;  %p1063_p8 = scmp.lt.u32.totalorder %s1056_s26, %s1680_s4 }
  0x45   : > { %p1059_p3 = pnand %p1057_p9, %p1030_p5 }
  0x47   : > { %p1060_p7 = pneg %p1059_p3 }
  0x49   : > { %p1065_p12 = pnand %p1063_p8, %p1060_p7 }
  0x4b   : > { %1068 = shalt.err (!%p1065_p12)
}
  0x4c   : > { %s1069_s27 = scalar_lea.vmem %s1402_s17, 256  ;;  %p1077_p10 = scmp.lt.s32.totalorder %s1402_s17, %s1402_s17 }
  0x4d   : > { %p1070_p1 = scmp.ne.s32.totalorder %s1402_s17, %s1069_s27  ;;  %p1078_p11 = scmp.lt.s32.totalorder %s1069_s27, %s1069_s27 }
  0x4f   : > { %p1072_p4 = pnand %p1070_p1, %p1030_p5  ;;  %p1079_p13 = por %p1078_p11, %p1077_p10 }
  0x51   : > { %p1073_p6 = pneg %p1072_p4 }
  0x53   : > { %p1080_p0 = pnand %p1079_p13, %p1073_p6 }
  0x55   : > { %1083 = shalt.err (!%p1080_p0)
}
  0x56   : > { %s1252_s8 = smov 64   ;;  %s1253_s30 = smov 4  }
  0x57   : > { %930 = dma.hbm_to_vmem [thread:$0]  (!%p1398_p2), %s1680_s4, 256, %s1402_s17, [#allocation6], %s1252_s8, %s1252_s8, %s1253_s30  }
  0x58   : > { %s39_s24 = sadd.s32 1, %s1240_s14  ;;  %s42_s26 = sadd.s32 1, %s1244_s15 }
  0x59   : > { %p40_p5 = scmp.ge.s32.totalorder %s39_s24, 4  ;;  %s330_s21 = sand.u32 1, %s1228_s11  }
  0x5a   : > { %s852_s29 = sshll.u32 %s330_s21, 4  ;;  %s853_s27 = sshll.u32 %s1240_s14, 1 }
  0x5b   : > { %s1703_s24 = smov (%p40_p5, %s39_s24), 0  ;;  %s1705_s26 = smov (!%p40_p5, %s42_s26), %s1244_s15 }
  0x5c   : > { %1681 = sst [smem:[#allocation20_spill]] %s1703_s24  ;;  %s47_s9 = ssub.s32 %s1240_s14, %s1703_s24 }
  0x5d   : > { %p44_p9 = scmp.ge.s32.totalorder %s1705_s26, 2  ;;  %s854_s18 = sshll.u32 %s1244_s15, 3 }
  0x5e   : > { %s334_s19 = scalar_lea.vmem [#allocation2], %s852_s29  ;;  %s340_s8 = sadd.s32 %s854_s18, %s853_s27 }
  0x5f   : > { %s343_s17 = sshll.u32 %s334_s19, 4  ;;  %s1707_s26 = smov (%p44_p9, %s1705_s26), 0  ;;  %s1463_s17 = int_to_ptr.vmem [resolvable:$true] %s343_s17 }
  0x60   : > { %s46_s30 = ssub.s32 %s1244_s15, %s1707_s26  ;;  %s855_s16 = sshll.u32 %s340_s8, 7 }
  0x61   : > { %s48_s1 = sor.u32 %s47_s9, %s46_s30  ;;  %s1470_s24 = scalar_lea.hbm %s1636_s0, %s855_s16 }
  0x62   : > { %p49_p2 = scmp.eq.s32.totalorder %s48_s1, 0  ;;  %s1682_s29 = sadd.s32 1, %s1228_s11 }
  0x63   : > { %s1477_s14 = scalar_lea.sflag [#allocation3], %s330_s21  ;;  %s1084_s27 = scalar_lea.hbm %s1470_s24, 256 }
  0x64   : > { %s1475_s19 = scalar_select %p49_p2, %s1228_s11, %s1682_s29  }
  0x65   : > { %p1085_p3 = scmp.ne.s32.totalorder %s1470_s24, %s1084_s27  ;;  %p1683_p7 = scmp.ne.s32.totalorder %s1677_s28, 0 }
  0x66   : > { %s1089_s9 = scalar_lea.hbm %s1636_s0, 2048  ;;  %p1090_p4 = scmp.lt.u32.totalorder %s1470_s24, %s1636_s0 }
  0x67   : > { %p1086_p8 = pneg %p1683_p7  ;;  %p1091_p6 = scmp.lt.u32.totalorder %s1089_s9, %s1084_s27 }
  0x68   : > { %p1093_p11 = scmp.lt.u32.totalorder %s1084_s27, %s1470_s24 }
  0x69   : > { %p1087_p12 = pnand %p1086_p8, %p1085_p3  ;;  %p1092_p10 = por %p1091_p6, %p1090_p4 }
  0x6b   : > { %p1088_p1 = pneg %p1087_p12  ;;  %p1094_p13 = por %p1093_p11, %p1092_p10 }
  0x6d   : > { %p1095_p0 = pnand %p1094_p13, %p1088_p1 }
  0x6f   : > { %1098 = shalt.err (!%p1095_p0)
}
  0x70   : > { %s1099_s1 = scalar_lea.vmem %s1463_s17, 256  ;;  %s1254_s21 = smov [#allocation2]  }
  0x71   : > { %p1100_p5 = scmp.ne.s32.totalorder %s1463_s17, %s1099_s1  ;;  %s1104_s30 = sshll.u32 %s1254_s21, 4  ;;  %s1105_s30 = int_to_ptr.vmem [resolvable:$false] %s1104_s30 }
  0x72   : > { %s1106_s16 = scalar_lea.vmem %s1105_s30, 512  ;;  %p1107_p3 = scmp.lt.s32.totalorder %s1463_s17, %s1105_s30 }
  0x73   : > { %p1102_p9 = pnand %p1100_p5, %p1086_p8  ;;  %p1108_p12 = scmp.lt.s32.totalorder %s1106_s16, %s1099_s1 }
  0x75   : > { %p1103_p2 = pneg %p1102_p9  ;;  %p1109_p4 = por %p1108_p12, %p1107_p3 }
  0x77   : > { %p1110_p6 = pnand %p1109_p4, %p1103_p2 }
  0x79   : > { %1113 = shalt.err (!%p1110_p6)
}
  0x7a   : > { %s1255_s29 = smov 128   ;;  %s1256_s27 = smov 8  }
  0x7b   : > { %934 = dma.hbm_to_vmem [thread:$0]  (!%p1683_p7), %s1470_s24, 256, %s1463_s17, %s1477_s14, %s1255_s29, %s1255_s29, %s1256_s27  }
  0x7c   : > { %p1684_p8 = scmp.ne.s32.totalorder %s1676_s25, 0 }
  0x7d   : > { %s1508_s4 = sand.u32 (!%p1684_p8), 1, %s1224_s10   ;;  %p1685_p1 = scmp.ne.s32.totalorder (!%p1684_p8), %s1671_s22, 0 }
  0x7e   : > { %355 = sbr.rel (%p1684_p8) target bundleno = 927 (0x39f), region = 52  ;;  %s857_s23 = sshll.u32 (!%p1684_p8), %s1508_s4, 4 }
  0x7f   : > { %s358_s9 = scalar_lea.sflag (!%p1684_p8), [#allocation3], %s1508_s4  ;;  %s361_s18 = scalar_lea.vmem (!%p1684_p8), [#allocation2], %s857_s23 }
  0x85   : > { %1203 = dma.done.wait (%p1685_p1), %s358_s9, 256  }
  0x86   : > { %1205 = vsyncadd (%p1685_p1), %s358_s9, 4294967040  ;;  %p1686_p10 = scmp.ne.s32.totalorder %s1669_s20, 0 }
  0x88   : > { %1207 = dma.done.wait (%p1686_p10), [#allocation6], 320  }
  0x89   : > { %1209 = vsyncadd (%p1686_p10), [#allocation6], 4294966976  ;;  %vm413_vm0 = vcmask 261120   ;;  %v411_v0 = vld [vmem:[%s361_s18] sm:$0xff]  ;;  %v412_v1 = vld [vmem:[%s361_s18 + $0x8] sm:$0xff]  ;;  %v1257_v14 = vmov 0.0  }
  0x8a   : > { %v414_v2 = vsel %vm413_vm0, %v411_v0, 0.0  ;;  %v417_v3 = vsel %vm413_vm0, %v412_v1, 0.0  ;;  %889 = vmatprep.subr.mxu0 %v1257_v14  ;;  %894 = vmatprep.subr.bf16.mxu1 %v1257_v14  ;;  %vm1258_vm1 = vmmov 0   ;;  %v1020_v15 = vld [vmem:[#allocation7] sm:$0xff]   ;;  %v862_v24 = vld [vmem:[%s1638_s2] ss:$0 sm:$0xff] }
  0x8b   : > { %415 = vadd.xlane.f32.xlu0 %v414_v2  ;;  %891 = vmatprep.mubr.msk.f32.mxu0 %vm1258_vm1, %v1257_v14  ;;  %v863_v28 = vld [vmem:[%s1639_s3] ss:$0 sm:$0xff]  ;;  %vm462_vm2 = vcmask 64512   ;;  %v1022_v36 = vld [vmem:[#allocation7 + $0x8] sm:$0xff]   ;;  %s875_s1 = sshll.u32 %s1236_s13, 2  ;;  %s860_s21 = sshll.u32 %s1508_s4, 1 }
  0x8c   : > { %898 = vmatprep.mubr.msk.bf16.mxu1 %vm1258_vm1, %v1257_v14  ;;  %895 = vmatpush3.bf16.msra.mxu1 %v1020_v15  ;;  %v461_v34 = vld [vmem:[#allocation5] sm:$0xf]  ;;  %v1023_v37 = vld [vmem:[%s1642_s6 + $0x8] sm:$0xff]   ;;  %s688_s30 = sadd.s32 %s1232_s12, %s875_s1  ;;  %s401_s18 = scalar_lea.vmem [#allocation8], %s860_s21  ;;  %vm667_vm3 = vcmask 254976  }
  0x8d   : > { %896 = vmatprep.subr.bf16.mxu1 %v1257_v14  ;;  %v1021_v35 = vld [vmem:[%s1642_s6] sm:$0xff]   ;;  %s876_s9 = sshll.u32 %s688_s30, 5  ;;  %s692_s14 = sshll.u32 %s401_s18, 4  ;;  %s1555_s14 = int_to_ptr.vmem [resolvable:$true] %s692_s14 }
  0x8e   : > { %v865_v41 = vld [vmem:[%s1641_s5] ss:$0 sm:$0xff]  ;;  %s408_s13 = scalar_lea.vmem [#allocation9], %s860_s21  ;;  %s1687_s20 = sld [smem:[#allocation18_spill]] }
  0x8f   : > { %418 = vadd.xlane.f32.xlu0 %v417_v3  ;;  %v869_v42 = vld [vmem:[%s1643_s7] ss:$0 sm:$0xff]  ;;  %s707_s12 = sshll.u32 %s408_s13, 4  ;;  %s1688_s28 = sld [smem:[#allocation23_spill]]  ;;  %s1562_s12 = int_to_ptr.vmem [resolvable:$true] %s707_s12 }
  0x90   : > { %897 = vmatpush3.bf16.msra.mxu1 %v1022_v36  ;;  %s1689_s1 = sld [smem:[#allocation24_spill]]  ;;  %s672_s30 = scalar_lea.sflag [#allocation4], %s1508_s4 }
  0x91   : > { %s1114_s16 = scalar_lea.vmem %s1555_s14, 32  ;;  %s1259_s29 = smov [#allocation8]  }
  0x92   : > { %p1115_p7 = scmp.ne.s32.totalorder %s1555_s14, %s1114_s16  ;;  %s1118_s27 = sshll.u32 %s1259_s29, 4  ;;  %s1119_s27 = int_to_ptr.vmem [resolvable:$false] %s1118_s27 }
  0x93   : > { %s1120_s23 = scalar_lea.vmem %s1119_s27, 64  ;;  %p1121_p5 = scmp.lt.s32.totalorder %s1555_s14, %s1119_s27 }
  0x94   : > { %p1690_p11 = scmp.ne.s32.totalorder %s1687_s20, 0  ;;  %p1122_p9 = scmp.lt.s32.totalorder %s1120_s23, %s1114_s16 }
  0x95   : > { %s1553_s24 = scalar_lea.hbm %s1688_s28, %s876_s9 }
  0x96   : > { %s1560_s21 = scalar_lea.hbm %s1689_s1, %s876_s9  ;;  %p1116_p13 = pnand %p1115_p7, %p1690_p11 }
  0x97   : > { %p1123_p2 = por %p1122_p9, %p1121_p5 }
  0x98   : > { %p1117_p0 = pneg %p1116_p13 }
  0x9a   : > { %p1124_p3 = pnand %p1123_p2, %p1117_p0 }
 0x118   : > { %v416_v4 = vpop.xlane.xlu0 %415 }
 0x119   : > { %v421_v5 = vmul.f32 0.03125, %v416_v4 }
 0x11b   : > { %v423_v6 = vsub.f32 %v411_v0, %v421_v5 }
 0x11c   : > { %v419_v7 = vpop.xlane.xlu0 %418 }
 0x11d   : > { %v422_v8 = vmul.f32 0.03125, %v419_v7  ;;  %v425_v9 = vmul.f32 %v423_v6, %v423_v6 }
 0x11f   : > { %v424_v10 = vsub.f32 %v412_v1, %v422_v8  ;;  %v427_v11 = vsel %vm413_vm0, %v425_v9, 0.0 }
 0x120   : > { %428 = vadd.xlane.f32.xlu1 %v427_v11 }
 0x121   : > { %v426_v12 = vmul.f32 %v424_v10, %v424_v10 }
 0x123   : > { %v430_v13 = vsel %vm413_vm0, %v426_v12, 0.0 }
 0x124   : > { %431 = vadd.xlane.f32.xlu1 %v430_v13 }
 0x1ad   : > { %v429_v16 = vpop.xlane.xlu1 %428 }
 0x1ae   : > { %v433_v17 = vmul.f32 0.03125, %v429_v16 }
 0x1b0   : > { %v435_v18 = vadd.f32 1e-05, %v433_v17 }
 0x1b1   : > { %v432_v19 = vpop.xlane.xlu1 %431 }
 0x1b2   : > { %1024 = vrsqrt.f32 %v435_v18  ;;  %v434_v20 = vmul.f32 0.03125, %v432_v19 }
 0x1b4   : > { %v436_v21 = vadd.f32 1e-05, %v434_v20 }
 0x1b6   : > { %1026 = vrsqrt.f32 %v436_v21 }
 0x1bc   : > { %v1025_v22 = vpop.eup %1024 }
 0x1bd   : > { %v439_v23 = vmul.f32 %v1025_v22, %v423_v6 }
 0x1bf   : > { %v448_v27 = vmul.f32 %v862_v24, %v439_v23 }
 0x1c0   : > { %v1027_v25 = vpop.eup %1026 }
 0x1c1   : > { %v440_v26 = vmul.f32 %v1027_v25, %v424_v10  ;;  %v457_v30 = vadd.f32 %v863_v28, %v448_v27 }
 0x1c3   : > { %v449_v29 = vmul.f32 %v862_v24, %v440_v26 }
 0x1c5   : > { %v458_v31 = vadd.f32 %v863_v28, %v449_v29 }
 0x1c7   : > { %v459_v32 = vadd.f32 %v458_v31, %v457_v30 }
 0x1c9   : > { %v460_v33 = vmul.f32 0.5, %v459_v32 }
 0x1cb   : > { %890 = vmatpush3.msra.mxu0 %v460_v33 }
 0x1cc   : > { %892 = vmatmul.mubr.msk.f32.vlgmr.msra.gmra.mrb[0].mxu0 %vm462_vm2, %v461_v34  ;;  %902 = vmatprep.subr.bf16.mxu0 %v1257_v14 }
 0x1cd   : > { %903 = vmatpush3.bf16.msra.mxu0 %v1021_v35  ;;  %906 = vmatprep.mubr.msk.bf16.mxu0 %vm1258_vm1, %v1257_v14 }
 0x1ce   : > { %904 = vmatprep.subr.bf16.mxu0 %v1257_v14 }
 0x1d1   : > { %905 = vmatpush3.bf16.msra.mxu0 %v1023_v37 }
 0x29f   : > { %v532_v38 = vpop.f32.mrb[0].mxu0 }
 0x2a0   : > { %v536_v39 = vpack.c.bf16 %v532_v38, %v532_v38  ;;  %v893_v40 = vpop.f32.mrb[1].mxu0 }
 0x2a2   : > { %899 = vmatmul.mubr.msk.bf16.vlgmr.msra.gmra.mrb[0].mxu1 %vm413_vm0, %v536_v39  ;;  %907 = vmatmul.mubr.msk.bf16.vlgmr.msra.gmra.mrb[4].mxu0 %vm413_vm0, %v536_v39 }
 0x375   : > { %v597_v43 = vpop.f32.mrb[0].mxu1  ;;  %v660_v44 = vpop.f32.mrb[4].mxu0 }
 0x376   : > { %v598_v45 = vadd.f32 %v865_v41, %v597_v43  ;;  %v661_v46 = vadd.f32 %v869_v42, %v660_v44  ;;  %v900_v47 = vpop.f32.mrb[1].mxu1  ;;  %v908_v48 = vpop.f32.mrb[5].mxu0 }
 0x377   : > { %v600_v49 = vpop.f32.mrb[2].mxu1  ;;  %v663_v50 = vpop.f32.mrb[6].mxu0 }
 0x378   : > { %v666_v51 = vpack.c.bf16 %v598_v45, %v598_v45  ;;  %v669_v52 = vpack.c.bf16 %v661_v46, %v661_v46  ;;  %v901_v53 = vpop.f32.mrb[3].mxu1  ;;  %v909_v54 = vpop.f32.mrb[7].mxu0 }
 0x37a   : > { %668 = vst.msk [vmem:[%s401_s18] sm:$0x3] %vm667_vm3, %v666_v51  ;;  %670 = vst.msk [vmem:[%s408_s13] sm:$0x3] %vm667_vm3, %v669_v52 }
 0x37b   : > { %1127 = shalt.err (!%p1124_p3)
}
 0x37c   : > { %s1128_s9 = scalar_lea.hbm %s1553_s24, 32  ;;  %s1132_s22 = scalar_lea.hbm %s1688_s28, 256 }
 0x37d   : > { %p1129_p12 = scmp.ne.s32.totalorder %s1553_s24, %s1128_s9  ;;  %p1133_p8 = scmp.lt.u32.totalorder %s1553_s24, %s1688_s28 }
 0x37e   : > { %p1134_p1 = scmp.lt.u32.totalorder %s1132_s22, %s1128_s9  ;;  %p1136_p7 = scmp.lt.u32.totalorder %s1128_s9, %s1553_s24 }
 0x37f   : > { %p1130_p4 = pnand %p1129_p12, %p1690_p11 }
 0x380   : > { %p1135_p10 = por %p1134_p1, %p1133_p8 }
 0x381   : > { %p1131_p6 = pneg %p1130_p4 }
 0x382   : > { %p1137_p13 = por %p1136_p7, %p1135_p10 }
 0x384   : > { %p1138_p0 = pnand %p1137_p13, %p1131_p6 }
 0x386   : > { %1141 = shalt.err (!%p1138_p0)
}
 0x387   : > { %920 = dma.vmem_to_hbm [thread:$0]  (%p1690_p11), %s1555_s14, 32, %s1553_s24, %s672_s30  }
 0x388   : > { %s677_s8 = scalar_lea.sflag [#allocation10], %s1508_s4  ;;  %s1142_s16 = scalar_lea.vmem %s1562_s12, 32 }
 0x389   : > { %p1143_p5 = scmp.ne.s32.totalorder %s1562_s12, %s1142_s16  ;;  %s1260_s29 = smov [#allocation9]  }
 0x38a   : > { %s1146_s27 = sshll.u32 %s1260_s29, 4  ;;  %s1147_s27 = int_to_ptr.vmem [resolvable:$false] %s1146_s27 }
 0x38b   : > { %p1144_p9 = pnand %p1143_p5, %p1690_p11  ;;  %s1148_s23 = scalar_lea.vmem %s1147_s27, 64 }
 0x38c   : > { %p1149_p3 = scmp.lt.s32.totalorder %s1562_s12, %s1147_s27  ;;  %p1150_p12 = scmp.lt.s32.totalorder %s1148_s23, %s1142_s16 }
 0x38d   : > { %p1145_p2 = pneg %p1144_p9 }
 0x38e   : > { %p1151_p4 = por %p1150_p12, %p1149_p3 }
 0x390   : > { %p1152_p6 = pnand %p1151_p4, %p1145_p2 }
 0x392   : > { %1155 = shalt.err (!%p1152_p6)
}
 0x393   : > { %s1156_s4 = scalar_lea.hbm %s1560_s21, 32  ;;  %s1160_s30 = scalar_lea.hbm %s1689_s1, 256 }
 0x394   : > { %p1157_p8 = scmp.ne.s32.totalorder %s1560_s21, %s1156_s4  ;;  %p1161_p7 = scmp.lt.u32.totalorder %s1560_s21, %s1689_s1 }
 0x395   : > { %p1162_p13 = scmp.lt.u32.totalorder %s1160_s30, %s1156_s4  ;;  %p1164_p5 = scmp.lt.u32.totalorder %s1156_s4, %s1560_s21 }
 0x396   : > { %p1158_p1 = pnand %p1157_p8, %p1690_p11 }
 0x397   : > { %p1163_p0 = por %p1162_p13, %p1161_p7 }
 0x398   : > { %p1159_p10 = pneg %p1158_p1 }
 0x399   : > { %p1165_p9 = por %p1164_p5, %p1163_p0 }
 0x39b   : > { %p1166_p2 = pnand %p1165_p9, %p1159_p10 }
 0x39d   : > { %1169 = shalt.err (!%p1166_p2)
}
 0x39e   : > { %921 = dma.vmem_to_hbm [thread:$0]  (%p1690_p11), %s1562_s12, 32, %s1560_s21, %s677_s8  }
 0x39f PF: > { %s1691_s13 = sld [smem:[#allocation17_spill]]  ;;  %s1692_s22 = sld [smem:[#allocation15_spill]] }
 0x3a0   : > { %s1693_s25 = sld [smem:[#allocation19_spill]] }
 0x3a5   : > { %p947_p3 = scmp.ge.s32.totalorder %s1691_s13, 2  ;;  %s719_s17 = sand.u32 1, %s1692_s22  }
 0x3a6   : > { %p1694_p12 = scmp.ne.s32.totalorder %s1693_s25, 0  ;;  %s720_s16 = scalar_lea.sflag [#allocation4], %s719_s17 }
 0x3a8   : > { %p936_p4 = pnand %p947_p3, %p1694_p12 }
 0x3aa   : > { %1211 = dma.done.wait (!%p936_p4), %s720_s16, 32  }
 0x3ab   : > { %1213 = vsyncadd (!%p936_p4), %s720_s16, 4294967264  ;;  %s729_s29 = scalar_lea.sflag [#allocation10], %s719_s17 }
 0x3ac   : > { %1215 = dma.done.wait (!%p936_p4), %s729_s29, 32  }
 0x3ad   : > { %1217 = vsyncadd (!%p936_p4), %s729_s29, 4294967264  ;;  %s30_s16 = sadd.s32 1, %s1691_s13   ;;  %s1695_s12 = sld [smem:[#allocation16_spill]] }
 0x3ae   : > { %p27_p6 = scmp.ge.s32.totalorder %s30_s16, 10   ;;  %s1696_s14 = sld [smem:[#allocation20_spill]] }
 0x3af   : > { %s1697_s30 = smov %s1224_s10  ;;  %s1698_s10 = smov %s1228_s11 }
 0x3b0   : > { %s1699_s11 = smov %s1475_s19  ;;  %s1700_s13 = smov %s1244_s15 }
 0x3b1   : > { %s1701_s15 = smov %s1707_s26  ;;  %29 = sbr.rel (!%p27_p6) target bundleno = 15 (0xf), region = 122 }
 0x3b8   :  { %734 = vsyncpa [#allocation3], 1 }
 0x3b9   :  { %736 = vsyncpa [#allocation3 + $0x1], 1 }
 0x3ba   :  { %737 = vsyncpa [#allocation6], 1 }
 0x3bb   :  { %738 = vsyncpa [#allocation4], 1 }
 0x3bc   :  { %740 = vsyncpa [#allocation4 + $0x1], 1 }
 0x3bd   :  { %741 = vsyncpa [#allocation10], 1 }
 0x3be   :  { %743 = vsyncpa [#allocation10 + $0x1], 1 }

</bundles_post_ra>
